<compile_context>
chip_gen: v7x
topology: tpu7x:2x2x1
jax: 0.10.0
libtpu: 0.0.40
codegen_flags: <defaults>
</compile_context>

<pallas_src>
import functools

import jax
import jax.numpy as jnp
from jax import lax
from jax.experimental import pallas as pl
from jax.experimental.pallas import tpu as pltpu


def _round_up(a, b):
    return ((a + b - 1) // b) * b


def scorpion_kernel(proxy_ref, x_ref, gid_ref, out_ref, *, P, E):
    """One (split s, tile k) grid step.

    proxy_ref: (P*E, D) bf16, resident.
    x_ref:     (TN, D)  f32, streamed x tile (cast to bf16 in-kernel).
    gid_ref:   (1, TN)  int32, per-element group id (== G for padded rows).
    out_ref:   (1, G, P) f32, per-split partial group sums (resident over k).
    """
    k = pl.program_id(1)
    tn = x_ref.shape[0]
    G = out_ref.shape[1]

    @pl.when(k == 0)
    def _():
        out_ref[...] = jnp.zeros_like(out_ref)

    # Similarity matmul on the MXU: (P*E, D) x (TN, D)^T -> (P*E, TN) f32.
    # x arrives in f32 (single HBM pass); cast to bf16 here for the MXU.
    x_bf = x_ref[...].astype(jnp.bfloat16)
    sim = lax.dot_general(
        proxy_ref[...], x_bf,
        dimension_numbers=(((1,), (1,)), ((), ())),
        preferred_element_type=jnp.float32)                      # (P*E, TN)

    # max over the E proxies of each set (f32).
    if E % 8 == 0:
        # Sublane-aligned: the reshape is a free view, max is an XLU reduce.
        t = jnp.max(sim.reshape(P, E, tn), axis=1)                # (P, TN)
    else:
        # A misaligned reshape would force a VMEM relayout every step; use an
        # unrolled elementwise maximum over E strided row-slices instead.
        t = lax.slice(sim, (0, 0), ((P - 1) * E + 1, tn), (E, 1))
        for e in range(1, E):
            t = jnp.maximum(
                t, lax.slice(sim, (e, 0), ((P - 1) * E + e + 1, tn), (E, 1)))

    # Segment one-hot in lane-dense (G, TN) layout: one VPU compare.
    # Padded tail rows carry gid == G and therefore match no group.
    gidx = lax.broadcasted_iota(jnp.int32, (G, tn), 0)            # (G, TN)
    seg = (gid_ref[...] == gidx).astype(jnp.float32)              # (G, TN)

    # Per-group sum as a small MXU matmul, accumulated directly in (G, P).
    upd = lax.dot_general(
        seg, t, dimension_numbers=(((1,), (1,)), ((), ())),
        preferred_element_type=jnp.float32)                       # (G, P)
    out_ref[...] += upd[None, :, :]


def scorpion_forward(proxy_sets, x, index, *, tile_n=2048, n_split=2):
    """Scorpion.forward.

    proxy_sets: (P, E, D) f32, x: (N, D) f32, index: (G,) int32 group sizes
    (sum == N). Returns (G, P) f32, L2-normalized along dim 1.

    tile_n: N-tile size (multiple of 256; sweep 2048-8192). The practical cap
    is keeping the (P*E, tile_n) f32 sim intermediate under ~0.5-1 MB, which
    is the same constraint on v5e/v6e/v7x -- VMEM capacity differences do not
    matter at these footprints.
    n_split: parallel leading grid axis; engages both TensorCores on v7x.
    """
    P, E, D = proxy_sets.shape
    N = x.shape[0]
    G = index.shape[0]

    # Effective tile: never pad more than one tile's worth past N.
    tile_n = min(int(tile_n), _round_up(N, 256))
    tile_n = max(256, _round_up(tile_n, 256))

    num_tiles = -(-N // tile_n)
    split = max(1, min(int(n_split), num_tiles))
    tiles_per_split = -(-num_tiles // split)
    n_pad = split * tiles_per_split * tile_n

    # Single f32 copy of x, zero-padded to the grid extent (no dtype pass).
    x_p = x if n_pad == N else jnp.pad(x, ((0, n_pad - N), (0, 0)))

    # Resident proxy operand: (P*E, D) bf16 (tiny, cast once).
    proxy_2d = proxy_sets.reshape(P * E, D).astype(jnp.bfloat16)

    # Per-element group id; padded rows get id == G (match no group).
    ends = jnp.cumsum(index.astype(jnp.int32))
    rows = jnp.arange(n_pad, dtype=jnp.int32)
    gid = jnp.searchsorted(ends, rows, side='right').astype(jnp.int32)
    gid = gid.reshape(1, n_pad)

    kernel = functools.partial(scorpion_kernel, P=P, E=E)

    partial_sums = pl.pallas_call(
        kernel,
        out_shape=jax.ShapeDtypeStruct((split, G, P), jnp.float32),
        grid_spec=pltpu.PrefetchScalarGridSpec(
            num_scalar_prefetch=0,
            grid=(split, tiles_per_split),
            in_specs=[
                pl.BlockSpec((P * E, D), lambda s, k: (0, 0)),     # resident
                pl.BlockSpec((tile_n, D),
                             lambda s, k: (s * tiles_per_split + k, 0)),
                pl.BlockSpec((1, tile_n),
                             lambda s, k: (0, s * tiles_per_split + k)),
            ],
            out_specs=pl.BlockSpec((1, G, P), lambda s, k: (s, 0, 0)),
        ),
        compiler_params=pltpu.CompilerParams(
            dimension_semantics=("parallel", "arbitrary")),
    )(proxy_2d, x_p, gid)

    # Tiny XLA epilogue: combine per-split partials + F.normalize(p=2, dim=1).
    tg = jnp.sum(partial_sums, axis=0)                             # (G, P)
    norm = jnp.sqrt(jnp.sum(tg * tg, axis=1, keepdims=True))
    return tg / jnp.maximum(norm, 1e-12)


def scorpion_reference(proxy_sets, x, index):
    """Pure-JAX reference mirroring the PyTorch forward (same bf16 operand
    cast for the similarity matmul as the kernel).

    Note: the bf16 cast can, in principle, flip which of the E proxies wins
    the max vs the f32 PyTorch module; this reference is cast-consistent with
    the kernel for a tight self-test.
    """
    sim = jnp.einsum('ped,nd->pen',
                     proxy_sets.astype(jnp.bfloat16),
                     x.astype(jnp.bfloat16),
                     preferred_element_type=jnp.float32)           # (P, E, N)
    t = jnp.max(sim, axis=1)                                       # (P, N)
    N = x.shape[0]
    ends = jnp.cumsum(index.astype(jnp.int32))
    starts = jnp.concatenate([jnp.zeros((1,), jnp.int32), ends[:-1]])
    rows = jnp.arange(N, dtype=jnp.int32)[:, None]
    seg = ((rows >= starts[None, :]) &
           (rows < ends[None, :])).astype(jnp.float32)             # (N, G)
    tg = (t @ seg).T                                               # (G, P)
    norm = jnp.sqrt(jnp.sum(tg * tg, axis=1, keepdims=True))
    return tg / jnp.maximum(norm, 1e-12)


if __name__ == "__main__":
    # Small synthetic sizes consistent with the module's forward.
    n_proxy_sets, n_elements, d = 4, 8, 32
    index = jnp.array([1300, 700, 500], dtype=jnp.int32)   # ragged vs tiles
    G = int(index.shape[0])
    N = int(index.sum())                                    # 2500

    key = jax.random.PRNGKey(0)
    k_proxy, k_x = jax.random.split(key)
    # proxy_sets.data.uniform_(-1, 1), deterministic.
    proxy_sets = jax.random.uniform(k_proxy, (n_proxy_sets, n_elements, d),
                                    minval=-1.0, maxval=1.0, dtype=jnp.float32)
    x = jax.random.normal(k_x, (N, d), dtype=jnp.float32)

    # Small tile + 2-way split at demo sizes to exercise the multi-step
    # accumulator, the parallel axis, and the padded tail; production default
    # is tile_n=2048.
    out = scorpion_forward(proxy_sets, x, index, tile_n=512, n_split=2)
    out = jax.block_until_ready(out)

    ref = scorpion_reference(proxy_sets, x, index)
    assert out.shape == (G, n_proxy_sets)
    assert jnp.allclose(out, ref, atol=1e-4, rtol=1e-4), "mismatch vs reference"

    print("KERNEL_OK")
</pallas_src>

<mosaic_0001>
module attributes {stable_mosaic.version = 11 : i64} {
  func.func @scorpion_kernel(%arg0: i32, %arg1: i32, %arg2: memref<32x32xbf16, #tpu.memory_space<vmem>>, %arg3: memref<512x32xf32, #tpu.memory_space<vmem>>, %arg4: memref<1x512xi32, #tpu.memory_space<vmem>>, %arg5: memref<1x3x4xf32, #tpu.memory_space<vmem>>) attributes {dimension_semantics = [#tpu.dimension_semantics<parallel>, #tpu.dimension_semantics<arbitrary>], iteration_bounds = array<i64: 2, 3>, scalar_prefetch = 0 : i64, scratch_operands = 0 : i64, tpu.core_type = #tpu.core_type<tc>, window_params = [{pipeline_mode = #tpu.pipeline_mode<synchronous>, transform_indices = @transform_0, window_bounds = array<i64: 32, 32>}, {transform_indices = @transform_1, window_bounds = array<i64: 512, 32>}, {transform_indices = @transform_2, window_bounds = array<i64: 1, 512>}, {transform_indices = @transform_3, window_bounds = array<i64: 1, 3, 4>}]} {
    %c0_i32 = arith.constant 0 : i32
    %0 = arith.cmpi eq, %arg1, %c0_i32 : i32
    %1 = arith.extui %0 : i1 to i32
    %c0_i32_0 = arith.constant 0 : i32
    %2 = arith.cmpi ne, %1, %c0_i32_0 : i32
    scf.if %2 {
      %cst_14 = arith.constant 0.000000e+00 : f32
      %20 = vector.broadcast %cst_14 : f32 to vector<1x3x4xf32>
      %c0_15 = arith.constant 0 : index
      %c0_16 = arith.constant 0 : index
      %c0_17 = arith.constant 0 : index
      %21 = vector.load %arg5[%c0_15, %c0_16, %c0_17] : memref<1x3x4xf32, #tpu.memory_space<vmem>>, vector<1x3x4xf32>
      tpu.vector_store %arg5[%c0_15, %c0_16, %c0_17], %20 {strides = array<i32>} : memref<1x3x4xf32, #tpu.memory_space<vmem>>, vector<1x3x4xf32>,
    } else {
    }
    %c0 = arith.constant 0 : index
    %c0_1 = arith.constant 0 : index
    %3 = vector.load %arg3[%c0, %c0_1] : memref<512x32xf32, #tpu.memory_space<vmem>>, vector<512x32xf32>
    %4 = arith.truncf %3 : vector<512x32xf32> to vector<512x32xbf16>
    %c0_2 = arith.constant 0 : index
    %c0_3 = arith.constant 0 : index
    %5 = vector.load %arg2[%c0_2, %c0_3] : memref<32x32xbf16, #tpu.memory_space<vmem>>, vector<32x32xbf16>
    %cst = arith.constant dense<0.000000e+00> : vector<32x512xf32>
    %6 = tpu.matmul %5, %4, %cst {dimension_numbers = #tpu.dot_dimension_numbers<[1], [1], [0], [0], [0, 0, 1, 0], [], []>} : vector<32x32xbf16>, vector<512x32xbf16>, vector<32x512xf32> -> vector<32x512xf32>
    %7 = vector.shape_cast %6 : vector<32x512xf32> to vector<4x8x512xf32>
    %cst_4 = arith.constant dense<0xFF800000> : vector<4x512xf32>
    %8 = vector.multi_reduction <maximumf>, %7, %cst_4 [1] : vector<4x8x512xf32> to vector<4x512xf32>
    %9 = tpu.iota {dimensions = array<i32: 0>} : vector<3x512xi32>
    %c0_5 = arith.constant 0 : index
    %c0_6 = arith.constant 0 : index
    %10 = vector.load %arg4[%c0_5, %c0_6] : memref<1x512xi32, #tpu.memory_space<vmem>>, vector<1x512xi32>
    %11 = vector.broadcast %10 : vector<1x512xi32> to vector<3x512xi32>
    %12 = arith.cmpi eq, %11, %9 : vector<3x512xi32>
    %13 = arith.extui %12 : vector<3x512xi1> to vector<3x512xi32>
    %14 = arith.sitofp %13 : vector<3x512xi32> to vector<3x512xf32>
    %cst_7 = arith.constant dense<0.000000e+00> : vector<3x4xf32>
    %15 = tpu.matmul %14, %8, %cst_7 {dimension_numbers = #tpu.dot_dimension_numbers<[1], [1], [0], [0], [0, 0, 1, 0], [], []>} : vector<3x512xf32>, vector<4x512xf32>, vector<3x4xf32> -> vector<3x4xf32>
    %c0_8 = arith.constant 0 : index
    %c0_9 = arith.constant 0 : index
    %c0_10 = arith.constant 0 : index
    %16 = vector.load %arg5[%c0_8, %c0_9, %c0_10] : memref<1x3x4xf32, #tpu.memory_space<vmem>>, vector<1x3x4xf32>
    %17 = vector.shape_cast %15 : vector<3x4xf32> to vector<1x3x4xf32>
    %18 = arith.addf %16, %17 : vector<1x3x4xf32>
    %c0_11 = arith.constant 0 : index
    %c0_12 = arith.constant 0 : index
    %c0_13 = arith.constant 0 : index
    %19 = vector.load %arg5[%c0_11, %c0_12, %c0_13] : memref<1x3x4xf32, #tpu.memory_space<vmem>>, vector<1x3x4xf32>
    tpu.vector_store %arg5[%c0_11, %c0_12, %c0_13], %18 {strides = array<i32>} : memref<1x3x4xf32, #tpu.memory_space<vmem>>, vector<1x3x4xf32>,
    return
  }
  func.func @transform_0(%arg0: i32, %arg1: i32) -> (i32, i32) {
    %c0_i32 = arith.constant 0 : i32
    %c0_i32_0 = arith.constant 0 : i32
    %c0_i32_1 = arith.constant 0 : i32
    return %c0_i32, %c0_i32_0 : i32, i32
  }
  func.func @transform_1(%arg0: i32, %arg1: i32) -> (i32, i32) {
    %c3_i32 = arith.constant 3 : i32
    %0 = arith.muli %arg0, %c3_i32 : i32
    %1 = arith.addi %0, %arg1 : i32
    %c0_i32 = arith.constant 0 : i32
    %c0_i32_0 = arith.constant 0 : i32
    return %1, %c0_i32 : i32, i32
  }
  func.func @transform_2(%arg0: i32, %arg1: i32) -> (i32, i32) {
    %c3_i32 = arith.constant 3 : i32
    %0 = arith.muli %arg0, %c3_i32 : i32
    %1 = arith.addi %0, %arg1 : i32
    %c0_i32 = arith.constant 0 : i32
    %c0_i32_0 = arith.constant 0 : i32
    return %c0_i32, %1 : i32, i32
  }
  func.func @transform_3(%arg0: i32, %arg1: i32) -> (i32, i32, i32) {
    %c0_i32 = arith.constant 0 : i32
    %c0_i32_0 = arith.constant 0 : i32
    %c0_i32_1 = arith.constant 0 : i32
    return %arg0, %c0_i32, %c0_i32_0 : i32, i32, i32
  }
}

</mosaic_0001>

<bundles_post_ra>
// kernel: tpu_custom_call.1
= control target key start
LH: loop header
LB: loop body
LE: loop exit
PB: predicated region body
PF: predicated region fallthrough
CT: control target
= control target key end

     0   :  { %s1123_s12 = smov 0   ;;  %s1125_s13 = smov 0   ;;  %s1356_s0 = inlined_call_operand.vmem [shape: bf16[32,32], index: 0, kind: input, shape index: {}]   ;;  %s1357_s1 = inlined_call_operand.vmem [shape: f32[3072,32], index: 1, kind: input, shape index: {}]   ;;  %s1358_s2 = inlined_call_operand.vmem [shape: s32[1,3072], index: 2, kind: input, shape index: {}]   ;;  %s1359_s3 = inlined_call_operand.vmem [shape: f32[2,3,4], index: 3, kind: output, shape index: {}]  }
   0x1   :  { %s1127_s14 = smov 0   ;;  %s1129_s15 = smov 0  }
   0x2   :  { %s1131_s16 = smov 0  }
   0x3 LB: > { %s22_s17 = sadd.s32 1, %s1091_s14  ;;  %s25_s18 = sadd.s32 1, %s1095_s15  ;;  %s1099_s16 = sphi %s1131_s16, %s13_s16   ;;  %s1095_s15 = sphi %s1129_s15, %s1363_s15   ;;  %s1091_s14 = sphi %s1127_s14, %s1362_s14   ;;  %s1087_s13 = sphi %s1125_s13, %s1361_s13   ;;  %s1083_s12 = sphi %s1123_s12, %s1360_s12  }
   0x4   : > { %p23_p0 = scmp.ge.s32.totalorder %s22_s17, 3  ;;  %p939_p1 = scmp.ge.s32.totalorder %s1099_s16, 1 }
   0x5   : > { %p176_p2 = scmp.lt.s32.totalorder %s1099_s16, 7 }
   0x6   : > { %s1365_s17 = smov (%p23_p0, %s22_s17), 0  ;;  %s1367_s18 = smov (!%p23_p0, %s25_s18), %s1095_s15 }
   0x7   : > { %p177_p3 = pnand %p939_p1, %p176_p2  ;;  %p27_p4 = scmp.ge.s32.totalorder %s1367_s18, 2 }
   0x8   : > { %s207_s19 = smul.u32 (!%p177_p3), 3, %s1087_s13  ;;  %p226_p5 = scmp.lt.s32.totalorder (!%p177_p3), %s1087_s13, 1 }
   0x9   : > { %s1369_s18 = smov (%p27_p4, %s1367_s18), 0  ;;  %180 = sbr.rel (%p177_p3) target bundleno = 558 (0x22e), region = 32 }
   0xa   : > { %s208_s20 = sadd.s32 (!%p177_p3), %s1083_s12, %s207_s19  ;;  %p944_p8 = scmp.ne.s32.totalorder (!%p177_p3), %s1083_s12, 0 }
   0xb   : > { %s940_s21 = sshll.u32 (!%p177_p3), %s208_s20, 6  ;;  %s942_s22 = sshll.u32 (!%p177_p3), %s208_s20, 2 }
   0xc   : > { %p210_p6 = scmp.lt.s32.totalorder (!%p177_p3), %s940_s21, 383  ;;  %p220_p7 = scmp.lt.s32.totalorder (!%p177_p3), %s942_s22, 23 }
  0x10   : > { %s1371_s13 = smov (!%p226_p5, %s1087_s13), 1  ;;  %s1373_s21 = smov (!%p210_p6, %s940_s21), 383 }
  0x11   : > { %s1375_s22 = smov (!%p220_p7, %s942_s22), 23  ;;  %s941_s23 = sshll.u32 %s1373_s21, 3  ;;  %vm235_vm0 = vcmask (!%p944_p8), 26624   ;;  %v1101_v0 = vmov (!%p944_p8), 0.0  }
  0x12   : > { %s943_s24 = sshll.u32 %s1371_s13, 2  ;;  %s1161_s27 = scalar_lea.vmem %s1357_s1, %s941_s23 }
  0x13   : > { %s222_s30 = scalar_lea.vmem %s1358_s2, %s1375_s22  ;;  %s1170_s6 = scalar_lea.vmem %s1359_s3, %s943_s24 }
  0x14   : > { %234 = sbr.rel (%p944_p8) target bundleno = 27 (0x1b), region = 36  ;;  %236 = vst.msk [vmem:[%s1170_s6] sm:$0x7] (!%p944_p8), %vm235_vm0, %v1101_v0 }
  0x1b PF: > { %v253_v1 = vld [vmem:[%s1161_s27 + $0x80] sm:$0xff]  ;;  %v254_v2 = vld [vmem:[%s1161_s27 + $0x88] sm:$0xff]  ;;  %vm347_vm1 = vcmask 261120   ;;  %v255_v12 = vld [vmem:[%s1161_s27 + $0x90] sm:$0xff]  ;;  %vm699_vm6 = vcmask 1041409   ;;  %vm701_vm7 = vcmask 1042434  }
  0x1c   : > { %v285_v3 = vld [vmem:[%s1161_s27 + $0x180] sm:$0xff]  ;;  %v309_v4 = vpack.c.bf16 %v254_v2, %v253_v1  ;;  %v286_v5 = vld [vmem:[%s1161_s27 + $0x188] sm:$0xff]  ;;  %v256_v14 = vld [vmem:[%s1161_s27 + $0x98] sm:$0xff]  ;;  %vm703_vm8 = vcmask 1043459   ;;  %vm860_vm9 = vcmask 26624  }
  0x1d   : > { %v237_v6 = vld [vmem:[%s1161_s27] sm:$0xff]  ;;  %v238_v7 = vld [vmem:[%s1161_s27 + $0x8] sm:$0xff]  ;;  %v325_v8 = vpack.c.bf16 %v286_v5, %v285_v3  ;;  %v287_v15 = vld [vmem:[%s1161_s27 + $0x190] sm:$0xff]  ;;  %v310_v18 = vpack.c.bf16 %v256_v14, %v255_v12 }
  0x1e   : > { %v301_v9 = vpack.c.bf16 %v238_v7, %v237_v6  ;;  %v269_v10 = vld [vmem:[%s1161_s27 + $0x100] sm:$0xff]  ;;  %v270_v11 = vld [vmem:[%s1161_s27 + $0x108] sm:$0xff]  ;;  %1001 = vmatprep.subr.msk.bf16.mxu0 %vm347_vm1, %v309_v4  ;;  %v288_v16 = vld [vmem:[%s1161_s27 + $0x198] sm:$0xff] }
  0x1f   : > { %v317_v13 = vpack.c.bf16 %v270_v11, %v269_v10  ;;  %1009 = vmatprep.subr.msk.bf16.mxu1 %vm347_vm1, %v325_v8  ;;  %v326_v19 = vpack.c.bf16 %v288_v16, %v287_v15  ;;  %v239_v20 = vld [vmem:[%s1161_s27 + $0x10] sm:$0xff]  ;;  %v240_v21 = vld [vmem:[%s1161_s27 + $0x18] sm:$0xff]  ;;  %v257_v27 = vld [vmem:[%s1161_s27 + $0xa0] sm:$0xff] }
  0x20   : > { %v355_v17 = vsel %vm347_vm1, %v301_v9, 0  ;;  %v271_v22 = vld [vmem:[%s1161_s27 + $0x110] sm:$0xff]  ;;  %v272_v24 = vld [vmem:[%s1161_s27 + $0x118] sm:$0xff]  ;;  %v302_v25 = vpack.c.bf16 %v240_v21, %v239_v20  ;;  %v258_v28 = vld [vmem:[%s1161_s27 + $0xa8] sm:$0xff] }
  0x21   : > { %962 = vmatpush3.bf16.xpose.msra.mxu0 %v355_v17  ;;  %v403_v23 = vsel %vm347_vm1, %v317_v13, 0  ;;  %v318_v26 = vpack.c.bf16 %v272_v24, %v271_v22  ;;  %v289_v29 = vld [vmem:[%s1161_s27 + $0x1a0] sm:$0xff]  ;;  %v290_v30 = vld [vmem:[%s1161_s27 + $0x1a8] sm:$0xff]  ;;  %v311_v32 = vpack.c.bf16 %v258_v28, %v257_v27  ;;  %v259_v41 = vld [vmem:[%s1161_s27 + $0xb0] sm:$0xff] }
  0x22   : > { %982 = vmatpush3.bf16.xpose.msra.mxu1 %v403_v23  ;;  %1002 = vmatprep.subr.msk.bf16.mxu0 %vm347_vm1, %v310_v18  ;;  %v358_v31 = vsel %vm347_vm1, %v302_v25, 0  ;;  %v327_v34 = vpack.c.bf16 %v290_v30, %v289_v29  ;;  %v241_v35 = vld [vmem:[%s1161_s27 + $0x20] sm:$0xff]  ;;  %v242_v36 = vld [vmem:[%s1161_s27 + $0x28] sm:$0xff]  ;;  %v260_v42 = vld [vmem:[%s1161_s27 + $0xb8] sm:$0xff] }
  0x23   : > { %1010 = vmatprep.subr.msk.bf16.mxu1 %vm347_vm1, %v326_v19  ;;  %v406_v33 = vsel %vm347_vm1, %v318_v26, 0  ;;  %v273_v37 = vld [vmem:[%s1161_s27 + $0x120] sm:$0xff]  ;;  %v274_v38 = vld [vmem:[%s1161_s27 + $0x128] sm:$0xff]  ;;  %v303_v39 = vpack.c.bf16 %v242_v36, %v241_v35  ;;  %v291_v43 = vld [vmem:[%s1161_s27 + $0x1b0] sm:$0xff]  ;;  %v312_v46 = vpack.c.bf16 %v260_v42, %v259_v41 }
  0x24   : > { %v319_v40 = vpack.c.bf16 %v274_v38, %v273_v37  ;;  %v292_v44 = vld [vmem:[%s1161_s27 + $0x1b8] sm:$0xff]  ;;  %v243_v49 = vld [vmem:[%s1161_s27 + $0x30] sm:$0xff]  ;;  %v1222_v54 = vld [vmem:[%s1356_s0] sm:$0xff]  }
  0x25   : > { %v361_v45 = vsel %vm347_vm1, %v303_v39, 0  ;;  %v328_v48 = vpack.c.bf16 %v292_v44, %v291_v43  ;;  %v244_v50 = vld [vmem:[%s1161_s27 + $0x38] sm:$0xff]  ;;  %v275_v51 = vld [vmem:[%s1161_s27 + $0x130] sm:$0xff]  ;;  %v261_v56 = vld [vmem:[%s1161_s27 + $0xc0] sm:$0xff]  ;;  %977 = vmatprep.mubr.msk.bf16.mxu0 %vm347_vm1, %v1222_v54  ;;  %997 = vmatprep.mubr.msk.bf16.mxu1 %vm347_vm1, %v1222_v54 }
  0x26   : > { %v409_v47 = vsel %vm347_vm1, %v319_v40, 0  ;;  %v276_v52 = vld [vmem:[%s1161_s27 + $0x138] sm:$0xff]  ;;  %v304_v53 = vpack.c.bf16 %v244_v50, %v243_v49  ;;  %v262_v57 = vld [vmem:[%s1161_s27 + $0xc8] sm:$0xff]  ;;  %v293_v58 = vld [vmem:[%s1161_s27 + $0x1c0] sm:$0xff] }
  0x27   : > { %v320_v55 = vpack.c.bf16 %v276_v52, %v275_v51  ;;  %v294_v59 = vld [vmem:[%s1161_s27 + $0x1c8] sm:$0xff]  ;;  %v313_v61 = vpack.c.bf16 %v262_v57, %v261_v56  ;;  %v245_v0 = vld [vmem:[%s1161_s27 + $0x40] sm:$0xff]  ;;  %v263_v6 = vld [vmem:[%s1161_s27 + $0xd0] sm:$0xff]  ;;  %v652_v51 = vlaneseq }
  0x28   : > { %v364_v60 = vsel %vm347_vm1, %v304_v53, 0  ;;  %v329_v63 = vpack.c.bf16 %v294_v59, %v293_v58  ;;  %v246_v1 = vld [vmem:[%s1161_s27 + $0x48] sm:$0xff]  ;;  %v277_v2 = vld [vmem:[%s1161_s27 + $0x140] sm:$0xff]  ;;  %v264_v7 = vld [vmem:[%s1161_s27 + $0xd8] sm:$0xff] }
  0x29   : > { %964 = vmatpush3.bf16.xpose.msra.mxu0 %v358_v31  ;;  %v412_v62 = vsel %vm347_vm1, %v320_v55, 0  ;;  %v278_v3 = vld [vmem:[%s1161_s27 + $0x148] sm:$0xff]  ;;  %v305_v4 = vpack.c.bf16 %v246_v1, %v245_v0  ;;  %v295_v8 = vld [vmem:[%s1161_s27 + $0x1d0] sm:$0xff]  ;;  %v296_v9 = vld [vmem:[%s1161_s27 + $0x1d8] sm:$0xff]  ;;  %v314_v11 = vpack.c.bf16 %v264_v7, %v263_v6  ;;  %v1290_v52 = vshrl.u32 %v652_v51, 7 }
  0x2a   : > { %984 = vmatpush3.bf16.xpose.msra.mxu1 %v406_v33  ;;  %1003 = vmatprep.subr.msk.bf16.mxu0 %vm347_vm1, %v311_v32  ;;  %v321_v5 = vpack.c.bf16 %v278_v3, %v277_v2  ;;  %v330_v13 = vpack.c.bf16 %v296_v9, %v295_v8  ;;  %v247_v14 = vld [vmem:[%s1161_s27 + $0x50] sm:$0xff]  ;;  %v248_v15 = vld [vmem:[%s1161_s27 + $0x58] sm:$0xff]  ;;  %v265_v20 = vld [vmem:[%s1161_s27 + $0xe0] sm:$0xff] }
  0x2b   : > { %1011 = vmatprep.subr.msk.bf16.mxu1 %vm347_vm1, %v327_v34  ;;  %v367_v10 = vsel %vm347_vm1, %v305_v4, 0  ;;  %v279_v16 = vld [vmem:[%s1161_s27 + $0x150] sm:$0xff]  ;;  %v280_v17 = vld [vmem:[%s1161_s27 + $0x158] sm:$0xff]  ;;  %v306_v18 = vpack.c.bf16 %v248_v15, %v247_v14  ;;  %v266_v21 = vld [vmem:[%s1161_s27 + $0xe8] sm:$0xff]  ;;  %v661_v55 = vsub.s32 1, %v1290_v52  ;;  %v657_v56 = vsub.s32 0, %v1290_v52 }
  0x2c   : > { %v415_v12 = vsel %vm347_vm1, %v321_v5, 0  ;;  %v322_v19 = vpack.c.bf16 %v280_v17, %v279_v16  ;;  %v297_v22 = vld [vmem:[%s1161_s27 + $0x1e0] sm:$0xff]  ;;  %v298_v23 = vld [vmem:[%s1161_s27 + $0x1e8] sm:$0xff]  ;;  %v315_v25 = vpack.c.bf16 %v266_v21, %v265_v20  ;;  %v267_v34 = vld [vmem:[%s1161_s27 + $0xf0] sm:$0xff]  ;;  %v665_v57 = vsub.s32 2, %v1290_v52 }
  0x2d   : > { %v370_v24 = vsel %vm347_vm1, %v306_v18, 0  ;;  %v331_v27 = vpack.c.bf16 %v298_v23, %v297_v22  ;;  %v249_v28 = vld [vmem:[%s1161_s27 + $0x60] sm:$0xff]  ;;  %v250_v29 = vld [vmem:[%s1161_s27 + $0x68] sm:$0xff]  ;;  %v268_v35 = vld [vmem:[%s1161_s27 + $0xf8] sm:$0xff] }
  0x2e   : > { %v418_v26 = vsel %vm347_vm1, %v322_v19, 0  ;;  %v281_v30 = vld [vmem:[%s1161_s27 + $0x160] sm:$0xff]  ;;  %v282_v31 = vld [vmem:[%s1161_s27 + $0x168] sm:$0xff]  ;;  %v307_v32 = vpack.c.bf16 %v250_v29, %v249_v28  ;;  %v299_v36 = vld [vmem:[%s1161_s27 + $0x1f0] sm:$0xff]  ;;  %v316_v39 = vpack.c.bf16 %v268_v35, %v267_v34 }
  0x2f   : > { %v323_v33 = vpack.c.bf16 %v282_v31, %v281_v30  ;;  %v300_v37 = vld [vmem:[%s1161_s27 + $0x1f8] sm:$0xff]  ;;  %v251_v42 = vld [vmem:[%s1161_s27 + $0x70] sm:$0xff]  ;;  %v1060_v50 = vld [vmem:[%s1356_s0 + $0x8] sm:$0xff]  }
  0x30   : > { %v373_v38 = vsel %vm347_vm1, %v307_v32, 0  ;;  %v332_v41 = vpack.c.bf16 %v300_v37, %v299_v36  ;;  %v252_v43 = vld [vmem:[%s1161_s27 + $0x78] sm:$0xff]  ;;  %v283_v44 = vld [vmem:[%s1161_s27 + $0x170] sm:$0xff]  ;;  %v654_v53 = vld [vmem:[%s222_s30] sm:$0xf] }
  0x31   : > { %966 = vmatpush3.bf16.xpose.msra.mxu0 %v361_v45  ;;  %v421_v40 = vsel %vm347_vm1, %v323_v33, 0  ;;  %v284_v45 = vld [vmem:[%s1161_s27 + $0x178] sm:$0xff]  ;;  %v662_v58 = vrot.slane %v654_v53, %v661_v55 }
  0x32   : > { %986 = vmatpush3.bf16.xpose.msra.mxu1 %v409_v47  ;;  %1004 = vmatprep.subr.msk.bf16.mxu0 %vm347_vm1, %v312_v46  ;;  %v308_v46 = vpack.c.bf16 %v252_v43, %v251_v42  ;;  %v324_v47 = vpack.c.bf16 %v284_v45, %v283_v44 }
  0x33   : > { %1012 = vmatprep.subr.msk.bf16.mxu1 %vm347_vm1, %v328_v48  ;;  %vm672_vm2 = vcmp.eq.s32.totalorder %v662_v58, %v1290_v52 }
  0x34   : > { %v376_v48 = vsel %vm347_vm1, %v308_v46, 0  ;;  %v424_v49 = vsel %vm347_vm1, %v324_v47, 0 }
  0x39   : > { %968 = vmatpush3.bf16.xpose.msra.mxu0 %v364_v60  ;;  %v1301_v60 = vrot.slane %v654_v53, %v657_v56 }
  0x3a   : > { %988 = vmatpush3.bf16.xpose.msra.mxu1 %v412_v62  ;;  %1005 = vmatprep.subr.msk.bf16.mxu0 %vm347_vm1, %v313_v61  ;;  %v1303_v61 = vrot.slane %v654_v53, %v665_v57  ;;  %v1102_v62 = vmov 1.0  }
  0x3b   : > { %1013 = vmatprep.subr.msk.bf16.mxu1 %vm347_vm1, %v329_v63  ;;  %vm671_vm4 = vcmp.eq.s32.totalorder %v1301_v60, %v1290_v52 }
  0x3c   : > { %vm673_vm5 = vcmp.eq.s32.totalorder %v1303_v61, %v1290_v52 }
  0x41   : > { %970 = vmatpush3.bf16.xpose.msra.mxu0 %v367_v10 }
  0x42   : > { %990 = vmatpush3.bf16.xpose.msra.mxu1 %v415_v12  ;;  %1006 = vmatprep.subr.msk.bf16.mxu0 %vm347_vm1, %v314_v11 }
  0x43   : > { %1014 = vmatprep.subr.msk.bf16.mxu1 %vm347_vm1, %v330_v13 }
  0x49   : > { %972 = vmatpush3.bf16.xpose.msra.mxu0 %v370_v24 }
  0x4a   : > { %992 = vmatpush3.bf16.xpose.msra.mxu1 %v418_v26  ;;  %1007 = vmatprep.subr.msk.bf16.mxu0 %vm347_vm1, %v315_v25 }
  0x4b   : > { %1015 = vmatprep.subr.msk.bf16.mxu1 %vm347_vm1, %v331_v27 }
  0x51   : > { %974 = vmatpush3.bf16.xpose.msra.mxu0 %v373_v38 }
  0x52   : > { %994 = vmatpush3.bf16.xpose.msra.mxu1 %v421_v40  ;;  %1008 = vmatprep.subr.msk.bf16.mxu0 %vm347_vm1, %v316_v39 }
  0x53   : > { %1016 = vmatprep.subr.msk.bf16.mxu1 %vm347_vm1, %v332_v41 }
  0x59   : > { %976 = vmatpush3.bf16.xpose.msra.mxu0 %v376_v48 }
  0x5a   : > { %996 = vmatpush3.bf16.xpose.msra.mxu1 %v424_v49 }
  0x60   : > { %978 = vmatmul.mubr.msk.bf16.vlgmr.msra.gmra.mrb[0].mxu0 %vm347_vm1, %v1222_v54 }
  0x61   : > { %998 = vmatmul.mubr.msk.bf16.vlgmr.msra.gmra.mrb[0].mxu1 %vm347_vm1, %v1222_v54  ;;  %979 = vmatprep.mubr.msk.bf16.mxu0 %vm347_vm1, %v1060_v50  ;;  %v669_v54 = vsub.s32 3, %v1290_v52 }
  0x62   : > { %999 = vmatprep.mubr.msk.bf16.mxu1 %vm347_vm1, %v1060_v50 }
  0x63   : > { %v670_v59 = vrot.slane %v654_v53, %v669_v54 }
  0x65   : > { %vm674_vm3 = vcmp.eq.s32.totalorder %v670_v59, %v1290_v52 }
  0x68   : > { %980 = vmatmul.mubr.msk.bf16.gmra.mrb[4].mxu0 %vm347_vm1, %v1060_v50 }
  0x69   : > { %1000 = vmatmul.mubr.msk.bf16.gmra.mrb[4].mxu1 %vm347_vm1, %v1060_v50  ;;  %955 = vmatprep.mubr.msk.f32.mxu0 %vm672_vm2, %v1102_v62 }
  0x6a   : > { %957 = vmatprep.mubr.msk.f32.mxu1 %vm674_vm3, %v1102_v62 }
 0x133   : > { %v484_v63 = vpop.f32.mrb[0].mxu0 }
 0x134   : > { %v556_v0 = vrot.slane %v484_v63, 4  ;;  %v537_v1 = vpop.f32.mrb[0].mxu1  ;;  %v486_v2 = vpop.f32.mrb[1].mxu0 }
 0x135   : > { %v568_v3 = vrot.slane %v537_v1, 4  ;;  %v562_v4 = vrot.slane %v486_v2, 4  ;;  %v539_v5 = vpop.f32.mrb[1].mxu1  ;;  %v488_v6 = vpop.f32.mrb[2].mxu0 }
 0x136   : > { %v557_v7 = vmax.f32 %v484_v63, %v556_v0  ;;  %v574_v8 = vrot.slane %v539_v5, 4  ;;  %v580_v9 = vrot.slane %v488_v6, 4  ;;  %v541_v10 = vpop.f32.mrb[2].mxu1  ;;  %v490_v11 = vpop.f32.mrb[3].mxu0 }
 0x137   : > { %v569_v12 = vmax.f32 %v537_v1, %v568_v3  ;;  %v563_v13 = vmax.f32 %v486_v2, %v562_v4  ;;  %v592_v14 = vrot.slane %v541_v10, 4  ;;  %v586_v15 = vrot.slane %v490_v11, 4  ;;  %v543_v16 = vpop.f32.mrb[3].mxu1 }
 0x138   : > { %v558_v17 = vrot.slane %v557_v7, 2  ;;  %v575_v18 = vmax.f32 %v539_v5, %v574_v8  ;;  %v581_v19 = vmax.f32 %v488_v6, %v580_v9  ;;  %v598_v20 = vrot.slane %v543_v16, 4 }
 0x139   : > { %v570_v21 = vrot.slane %v569_v12, 2  ;;  %v564_v22 = vrot.slane %v563_v13, 2  ;;  %v593_v23 = vmax.f32 %v541_v10, %v592_v14  ;;  %v587_v24 = vmax.f32 %v490_v11, %v586_v15 }
 0x13a   : > { %v559_v25 = vmax.f32 %v557_v7, %v558_v17  ;;  %v576_v26 = vrot.slane %v575_v18, 2  ;;  %v582_v27 = vrot.slane %v581_v19, 2  ;;  %v599_v28 = vmax.f32 %v543_v16, %v598_v20 }
 0x13b   : > { %v571_v29 = vmax.f32 %v569_v12, %v570_v21  ;;  %v565_v30 = vmax.f32 %v563_v13, %v564_v22  ;;  %v594_v31 = vrot.slane %v593_v23, 2  ;;  %v588_v32 = vrot.slane %v587_v24, 2  ;;  %v494_v33 = vpop.f32.mrb[4].mxu0 }
 0x13c   : > { %v560_v34 = vrot.slane %v559_v25, 1  ;;  %v577_v35 = vmax.f32 %v575_v18, %v576_v26  ;;  %v583_v36 = vmax.f32 %v581_v19, %v582_v27  ;;  %v600_v37 = vrot.slane %v599_v28, 2  ;;  %v547_v38 = vpop.f32.mrb[4].mxu1  ;;  %v496_v39 = vpop.f32.mrb[5].mxu0 }
 0x13d   : > { %v572_v40 = vrot.slane %v571_v29, 1  ;;  %v566_v41 = vrot.slane %v565_v30, 1  ;;  %v595_v42 = vmax.f32 %v593_v23, %v594_v31  ;;  %v589_v43 = vmax.f32 %v587_v24, %v588_v32  ;;  %v549_v44 = vpop.f32.mrb[5].mxu1  ;;  %v498_v45 = vpop.f32.mrb[6].mxu0 }
 0x13e   : > { %v1313_v46 = vmax.f32 %v559_v25, %v560_v34  ;;  %v578_v47 = vrot.slane %v577_v35, 1  ;;  %v584_v48 = vrot.slane %v583_v36, 1  ;;  %v601_v49 = vmax.f32 %v599_v28, %v600_v37  ;;  %v551_v50 = vpop.f32.mrb[6].mxu1  ;;  %v500_v51 = vpop.f32.mrb[7].mxu0 }
 0x13f   : > { %v1315_v53 = vmax.f32 %v571_v29, %v572_v40  ;;  %v567_v55 = vmax.f32 %v565_v30, %v566_v41  ;;  %v596_v54 = vrot.slane %v595_v42, 1  ;;  %v590_v56 = vrot.slane %v589_v43, 1  ;;  %v553_v57 = vpop.f32.mrb[7].mxu1 }
 0x140   : > { %v579_v58 = vmax.f32 %v577_v35, %v578_v47  ;;  %v585_v59 = vmax.f32 %v583_v36, %v584_v48  ;;  %v602_v63 = vrot.slane %v601_v49, 1  ;;  %v604_v0 = vrot.slane %v494_v33, 4 }
 0x141   : > { %v597_v1 = vmax.f32 %v595_v42, %v596_v54  ;;  %v591_v2 = vmax.f32 %v589_v43, %v590_v56  ;;  %v616_v3 = vrot.slane %v547_v38, 4  ;;  %v610_v4 = vrot.slane %v496_v39, 4 }
 0x142   : > { %v603_v5 = vmax.f32 %v601_v49, %v602_v63  ;;  %v605_v6 = vmax.f32 %v494_v33, %v604_v0  ;;  %v622_v7 = vrot.slane %v549_v44, 4  ;;  %v628_v8 = vrot.slane %v498_v45, 4 }
 0x143   : > { %v617_v9 = vmax.f32 %v547_v38, %v616_v3  ;;  %v611_v10 = vmax.f32 %v496_v39, %v610_v4  ;;  %v640_v11 = vrot.slane %v551_v50, 4  ;;  %v634_v12 = vrot.slane %v500_v51, 4 }
 0x144   : > { %v606_v13 = vrot.slane %v605_v6, 2  ;;  %v623_v14 = vmax.f32 %v549_v44, %v622_v7  ;;  %v629_v15 = vmax.f32 %v498_v45, %v628_v8  ;;  %v646_v16 = vrot.slane %v553_v57, 4 }
 0x145   : > { %v618_v17 = vrot.slane %v617_v9, 2  ;;  %v612_v18 = vrot.slane %v611_v10, 2  ;;  %v641_v19 = vmax.f32 %v551_v50, %v640_v11  ;;  %v635_v20 = vmax.f32 %v500_v51, %v634_v12 }
 0x146   : > { %v607_v21 = vmax.f32 %v605_v6, %v606_v13  ;;  %v624_v22 = vrot.slane %v623_v14, 2  ;;  %v630_v23 = vrot.slane %v629_v15, 2  ;;  %v647_v24 = vmax.f32 %v553_v57, %v646_v16 }
 0x147   : > { %v619_v25 = vmax.f32 %v617_v9, %v618_v17  ;;  %v613_v26 = vmax.f32 %v611_v10, %v612_v18  ;;  %v642_v27 = vrot.slane %v641_v19, 2  ;;  %v636_v28 = vrot.slane %v635_v20, 2 }
 0x148   : > { %v608_v29 = vrot.slane %v607_v21, 1  ;;  %v625_v30 = vmax.f32 %v623_v14, %v624_v22  ;;  %v631_v31 = vmax.f32 %v629_v15, %v630_v23  ;;  %v648_v32 = vrot.slane %v647_v24, 2 }
 0x149   : > { %v620_v33 = vrot.slane %v619_v25, 1  ;;  %v614_v34 = vrot.slane %v613_v26, 1  ;;  %v643_v35 = vmax.f32 %v641_v19, %v642_v27  ;;  %v637_v36 = vmax.f32 %v635_v20, %v636_v28 }
 0x14a   : > { %v609_v37 = vmax.f32 %v607_v21, %v608_v29  ;;  %v626_v38 = vrot.slane %v625_v30, 1  ;;  %v632_v39 = vrot.slane %v631_v31, 1  ;;  %v649_v40 = vmax.f32 %v647_v24, %v648_v32 }
 0x14b   : > { %v621_v41 = vmax.f32 %v619_v25, %v620_v33  ;;  %v615_v42 = vmax.f32 %v613_v26, %v614_v34  ;;  %v644_v43 = vrot.slane %v643_v35, 1  ;;  %v638_v44 = vrot.slane %v637_v36, 1 }
 0x14c   : > { %v627_v45 = vmax.f32 %v625_v30, %v626_v38  ;;  %v633_v47 = vmax.f32 %v631_v31, %v632_v39  ;;  %v650_v48 = vrot.slane %v649_v40, 1  ;;  %v705_v49 = vsel %vm699_vm6, %v591_v2, %v567_v55 }
 0x14d   : > { %v645_v50 = vmax.f32 %v643_v35, %v644_v43  ;;  %v639_v51 = vmax.f32 %v637_v36, %v638_v44  ;;  %v706_v54 = vsel %vm701_vm7, %v615_v42, %v705_v49  ;;  %v711_v56 = vsel %vm699_vm6, %v603_v5, %v579_v58 }
 0x14e   : > { %v651_v57 = vmax.f32 %v649_v40, %v650_v48  ;;  %v712_v63 = vsel %vm701_vm7, %v627_v45, %v711_v56  ;;  %v700_v0 = vsel %vm699_vm6, %v585_v59, %v1313_v46  ;;  %v708_v3 = vsel %vm699_vm6, %v597_v1, %v1315_v53  ;;  %v858_v59 = vld [vmem:[%s1170_s6] sm:$0x7] }
 0x14f   : > { %v707_v4 = vsel %vm703_vm8, %v639_v51, %v706_v54  ;;  %v702_v55 = vsel %vm701_vm7, %v609_v37, %v700_v0  ;;  %v709_v2 = vsel %vm701_vm7, %v621_v41, %v708_v3 }
 0x150   : > { %718 = vmatprep.subr.mxu0 %v707_v4  ;;  %v713_v6 = vsel %vm703_vm8, %v651_v57, %v712_v63  ;;  %v704_v58 = vsel %vm703_vm8, %v633_v47, %v702_v55  ;;  %v710_v5 = vsel %vm703_vm8, %v645_v50, %v709_v2 }
 0x151   : > { %788 = vmatprep.subr.mxu1 %v713_v6  ;;  %719 = vmatpush1.xpose.msra.mxu0 %v704_v58 }
 0x152   : > { %789 = vmatpush1.xpose.msra.mxu1 %v710_v5 }
 0x154   : > { %956 = vmatmul.mubr.msk.f32.vlgmr.msra.gmra.mrb[8].mxu0 %vm671_vm4, %v1102_v62 }
 0x155   : > { %958 = vmatmul.mubr.msk.f32.vlgmr.msra.gmra.mrb[8].mxu1 %vm673_vm5, %v1102_v62 }
 0x227   : > { %v784_v46 = vpop.f32.mrb[8].mxu0 }
 0x228   : > { %v854_v53 = vpop.f32.mrb[8].mxu1  ;;  %v786_v1 = vpop.f32.mrb[9].mxu0 }
 0x229   : > { %v855_v7 = vadd.f32 %v854_v53, %v784_v46  ;;  %v856_v8 = vpop.f32.mrb[9].mxu1 }
 0x22b   : > { %v859_v9 = vadd.f32 %v858_v59, %v855_v7 }
 0x22d   : > { %861 = vst.msk [vmem:[%s1170_s6] sm:$0x7] %vm860_vm9, %v859_v9 }
 0x22e PF: > { %s13_s16 = sadd.s32 1, %s1099_s16   ;;  %s1360_s12 = smov %s1091_s14 }
 0x22f   : > { %p10_p9 = scmp.ge.s32.totalorder %s13_s16, 8   ;;  %s1361_s13 = smov %s1095_s15 }
 0x230   : > { %s1362_s14 = smov %s1365_s17  ;;  %s1363_s15 = smov %s1369_s18 }
 0x231   :  { %12 = sbr.rel (!%p10_p9) target bundleno = 3 (0x3), region = 69 }

</bundles_post_ra>
